<compile_context>
chip_gen: v6e
topology: v6e:2x2x1
jax: 0.10.0
libtpu: 0.0.40
codegen_flags: <defaults>
</compile_context>

<pallas_src>
import functools
import math

import jax
import jax.numpy as jnp
from jax.experimental import pallas as pl
from jax.experimental.pallas import tpu as pltpu

_LANE = 128  # lane (last-dim) granularity: feature dims padded to this


def _round_up(x, m):
    return ((x + m - 1) // m) * m


def _mlp_kernel(x_ref, *refs, relu_flags, dropout_ps, compute_dtype):
    """Fused MLP for one batch tile.

    refs layout: for each layer i -> (w_i, b_i[, mask_i if dropout_ps[i] > 0]),
    then o_ref last. Weights/masks are compute_dtype (bf16), biases are
    (1, out_pad) f32. All layers run back-to-back on-chip.
    """
    n_layers = len(relu_flags)
    o_ref = refs[-1]

    h = x_ref[...]                                    # (TB, in_pad) bf16
    r = 0
    for i in range(n_layers):
        w = refs[r][...]                              # (in_pad_i, out_pad_i)
        b = refs[r + 1][...]                          # (1, out_pad_i) f32
        r += 2
        # MXU: bf16 x bf16 -> f32 accumulation.
        y = jnp.dot(h, w, preferred_element_type=jnp.float32)
        # f32 VPU epilogue.
        y = y + b
        if relu_flags[i]:
            y = jnp.maximum(y, 0.0)
        p = dropout_ps[i]
        if p > 0.0:
            # Inverted dropout (matches F.dropout, training=True): mask is a
            # 0/1 bf16 array generated in the wrapper, scale applied in f32.
            m = refs[r][...]
            r += 1
            y = y * m.astype(jnp.float32) * (1.0 / (1.0 - p))
        if i + 1 < n_layers:
            # Keep inter-layer activation in bf16: numerically identical to
            # casting at the next matmul, halves the live footprint.
            h = y.astype(compute_dtype)
        else:
            h = y                                     # final layer stays f32
    o_ref[...] = h.astype(o_ref.dtype)


def _build_fused_mlp_call(batch_pad, tb, dims_pad, relu_flags, dropout_ps,
                          compute_dtype, out_dtype, flops, bytes_accessed,
                          vmem_limit_bytes):
    n_layers = len(dims_pad) - 1
    in_pad, out_pad = dims_pad[0], dims_pad[-1]
    grid = (batch_pad // tb,)

    # x / out / masks: tiled over the batch.  Weights / biases: same block at
    # every grid step -> resident in VMEM, DMA'd from HBM only once.
    in_specs = [pl.BlockSpec((tb, in_pad), lambda i: (i, 0))]
    for li in range(n_layers):
        ki, ni = dims_pad[li], dims_pad[li + 1]
        in_specs.append(pl.BlockSpec((ki, ni), lambda i: (0, 0)))
        in_specs.append(pl.BlockSpec((1, ni), lambda i: (0, 0)))
        if dropout_ps[li] > 0.0:
            in_specs.append(pl.BlockSpec((tb, ni), lambda i: (i, 0)))
    out_spec = pl.BlockSpec((tb, out_pad), lambda i: (i, 0))

    kernel = functools.partial(
        _mlp_kernel,
        relu_flags=tuple(relu_flags),
        dropout_ps=tuple(dropout_ps),
        compute_dtype=compute_dtype,
    )

    return pl.pallas_call(
        kernel,
        out_shape=jax.ShapeDtypeStruct((batch_pad, out_pad), out_dtype),
        grid_spec=pltpu.PrefetchScalarGridSpec(
            num_scalar_prefetch=0,
            grid=grid,
            in_specs=in_specs,
            out_specs=out_spec,
        ),
        compiler_params=pltpu.CompilerParams(
            dimension_semantics=("parallel",),
            vmem_limit_bytes=int(vmem_limit_bytes),
        ),
        cost_estimate=pl.CostEstimate(
            flops=int(flops), transcendentals=0,
            bytes_accessed=int(bytes_accessed)),
    )


class PallasMLP:
    """JAX/Pallas re-implementation of the PyTorch MLP module (fused kernel)."""

    def __init__(self, input_dim, hidden_dim, output_dim, act=False,
                 dropout=False, p=0.5, *, key=None, dtype=jnp.float32,
                 compute_dtype=jnp.bfloat16):
        self.act = bool(act)
        self.dropout = bool(dropout)
        self.p = float(p)
        self.training = True            # mirrors nn.Module default
        self.dtype = dtype
        self.compute_dtype = compute_dtype
        # bf16 packs 2 rows per sublane -> batch tiles in multiples of 16.
        self._granule = 16 if jnp.dtype(compute_dtype) == jnp.dtype(jnp.bfloat16) else 8

        dims = [int(input_dim)] + [int(d) for d in hidden_dim] + [int(output_dim)]
        self.dims = dims
        # Lane-dense padding: every feature dim rounded up to 128.
        self.dims_pad = [_round_up(d, _LANE) for d in dims]

        if key is None:
            key = jax.random.PRNGKey(0)
        self.params = []          # unpadded f32 params (reference / export)
        self.params_padded = []   # zero-padded bf16 W + f32 (1, N) bias
        for i in range(len(dims) - 1):
            fan_in, fan_out = dims[i], dims[i + 1]
            key, wk, bk = jax.random.split(key, 3)
            # Deterministic init mimicking nn.Linear's U(-1/sqrt(fan_in), ...).
            bound = 1.0 / math.sqrt(fan_in)
            w = jax.random.uniform(wk, (fan_in, fan_out), dtype, -bound, bound)
            b = jax.random.uniform(bk, (fan_out,), dtype, -bound, bound)
            self.params.append((w, b))

            kp, np_ = self.dims_pad[i], self.dims_pad[i + 1]
            wp = jnp.zeros((kp, np_), compute_dtype)
            wp = wp.at[:fan_in, :fan_out].set(w.astype(compute_dtype))
            bp = jnp.zeros((1, np_), jnp.float32)
            bp = bp.at[0, :fan_out].set(b.astype(jnp.float32))
            self.params_padded.append((wp, bp))

        self._call_cache = {}

    # ----- tiling plan ------------------------------------------------------
    def _plan_tiles(self, batch, dropout_ps):
        granule = self._granule
        batch_g = _round_up(max(int(batch), 1), granule)

        # VMEM capacity (v5e/v6e: 128 MiB, v7x: 64 MiB per core); fall back to
        # the most conservative (v7x) value if the query is unavailable.
        try:
            vmem_cap = int(pltpu.get_tpu_info().vmem_capacity_bytes)
        except Exception:
            vmem_cap = 64 * 1024 * 1024
        budget = int(vmem_cap * 0.75)   # leave headroom for compiler scratch

        cbytes = jnp.dtype(self.compute_dtype).itemsize
        obytes = jnp.dtype(self.dtype).itemsize
        # Resident weights/biases have a constant index_map, but Pallas still
        # double-buffers inputs by default -> count them twice.
        # TODO(synk): single-buffer with pipeline_mode=pl.Buffered(1) and add a
        # tiled-weight fallback for layers that overflow v7x's 64 MiB VMEM.
        fixed = 2 * sum(w.size * w.dtype.itemsize + b.size * b.dtype.itemsize
                        for w, b in self.params_padded)

        in_pad, out_pad = self.dims_pad[0], self.dims_pad[-1]
        max_pad = max(self.dims_pad)
        mask_cols = sum(self.dims_pad[i + 1]
                        for i, p in enumerate(dropout_ps) if p > 0.0)
        # Double-buffered x / out / mask tiles + live f32+bf16 intermediates.
        per_row = (2 * (in_pad * cbytes + out_pad * obytes + mask_cols * cbytes)
                   + 2 * max_pad * 4)

        tb = (budget - fixed) // max(per_row, 1)
        # 256-512 rows feeds the MXU well on all generations while keeping
        # spill/store traffic bounded (v5e has a single vst slot).
        tb = int(min(tb, 512, batch_g))
        tb = max(granule, (tb // granule) * granule)

        # Megacore (v7x has 2 TensorCores): keep >=2 grid steps when the batch
        # is large enough that splitting still gives MXU-sized tiles.
        if batch_g >= max(256, 2 * granule) and tb >= batch_g:
            half = -(-batch_g // 2)
            tb = max(granule, _round_up(half, granule))

        batch_pad = _round_up(batch_g, tb)

        need = fixed + tb * per_row
        vmem_limit = int(min(int(vmem_cap * 0.9),
                             max(32 << 20, int(need * 1.25))))
        return tb, batch_pad, vmem_limit

    # ----- forward ----------------------------------------------------------
    def __call__(self, x, *, key=None, seed=0):
        orig_shape = x.shape
        x2 = x.reshape(-1, self.dims[0])
        batch = x2.shape[0]

        n_layers = len(self.params)
        relu_flags = tuple(self.act and i != n_layers - 1
                           for i in range(n_layers))
        # The reference module applies dropout after EVERY layer (including the
        # last) whenever self.dropout is set and the module is training.
        use_dropout = self.dropout and self.training and self.p > 0.0
        dropout_ps = tuple(self.p if use_dropout else 0.0
                           for _ in range(n_layers))

        tb, batch_pad, vmem_limit = self._plan_tiles(batch, dropout_ps)
        in_pad, out_pad = self.dims_pad[0], self.dims_pad[-1]

        # Input: cast to bf16 (halves input DMA bytes); skip the zero-pad copy
        # when it is a no-op.
        if batch_pad == batch and in_pad == self.dims[0]:
            xp = x2.astype(self.compute_dtype)
        else:
            xp = jnp.zeros((batch_pad, in_pad), self.compute_dtype)
            xp = xp.at[:batch, :self.dims[0]].set(x2.astype(self.compute_dtype))

        # Per-layer dropout keep-masks (0/1), generated wrapper-side so the
        # kernel has no platform-specific PRNG dependency; applied in-kernel.
        if use_dropout and key is None:
            key = jax.random.PRNGKey(int(seed))

        flat_inputs = []
        for li, (wp, bp) in enumerate(self.params_padded):
            flat_inputs += [wp, bp]
            if dropout_ps[li] > 0.0:
                key, sub = jax.random.split(key)
                m = jax.random.bernoulli(
                    sub, 1.0 - self.p, (batch_pad, self.dims_pad[li + 1]))
                flat_inputs.append(m.astype(self.compute_dtype))

        cache_key = (batch_pad, tb, relu_flags, dropout_ps, vmem_limit)
        call = self._call_cache.get(cache_key)
        if call is None:
            flops = 2 * batch_pad * sum(self.dims_pad[i] * self.dims_pad[i + 1]
                                        for i in range(n_layers))
            bytes_accessed = (
                batch_pad * in_pad * jnp.dtype(self.compute_dtype).itemsize
                + sum(int(a.size) * a.dtype.itemsize for a in flat_inputs)
                + batch_pad * out_pad * jnp.dtype(self.dtype).itemsize)
            call = _build_fused_mlp_call(
                batch_pad, tb, self.dims_pad, relu_flags, dropout_ps,
                self.compute_dtype, self.dtype, flops, bytes_accessed,
                vmem_limit)
            self._call_cache[cache_key] = call

        out_full = call(xp, *flat_inputs)
        if batch_pad != batch or out_pad != self.dims[-1]:
            out = out_full[:batch, :self.dims[-1]]
        else:
            out = out_full
        return out.reshape(*orig_shape[:-1], self.dims[-1])


def _reference_mlp(mlp, x):
    """Pure-JAX reference (no dropout), same bf16-input/f32-accumulate math."""
    h = x.reshape(-1, mlp.dims[0])
    n = len(mlp.params)
    for i, (w, b) in enumerate(mlp.params):
        h = jnp.dot(h.astype(mlp.compute_dtype), w.astype(mlp.compute_dtype),
                    preferred_element_type=jnp.float32) + b.astype(jnp.float32)
        if mlp.act and i != n - 1:
            h = jnp.maximum(h, 0.0)
    return h.astype(mlp.dtype).reshape(*x.shape[:-1], mlp.dims[-1])


if __name__ == "__main__":
    key = jax.random.PRNGKey(0)
    kx, kp = jax.random.split(key)

    batch = 8
    input_dim, hidden_dim, output_dim = 32, (64, 48), 16
    x = jax.random.normal(kx, (batch, input_dim), jnp.float32)

    # Deterministic path: act=True, dropout disabled (eval mode).
    mlp = PallasMLP(input_dim, hidden_dim, output_dim,
                    act=True, dropout=False, p=0.5, key=kp)
    mlp.training = False
    out = jax.block_until_ready(mlp(x))
    ref = _reference_mlp(mlp, x)
    assert out.shape == (batch, output_dim)
    assert jnp.allclose(out, ref, atol=5e-4, rtol=5e-4), (
        "mismatch vs reference, max abs err = "
        f"{float(jnp.max(jnp.abs(out - ref)))}")

    # Dropout path (training mode): wrapper-generated masks, applied in-kernel.
    mlp_do = PallasMLP(input_dim, hidden_dim, output_dim,
                       act=True, dropout=True, p=0.5, key=kp)
    out_do = jax.block_until_ready(mlp_do(x, seed=1234))
    assert out_do.shape == (batch, output_dim)
    assert bool(jnp.all(jnp.isfinite(out_do)))
    # Final-layer dropout (as in the reference module) must zero some entries.
    assert bool(jnp.any(out_do == 0.0))

    # Eval-mode dropout module must match the deterministic reference exactly.
    mlp_do.training = False
    out_eval = jax.block_until_ready(mlp_do(x))
    assert jnp.allclose(out_eval, ref, atol=5e-4, rtol=5e-4)

    print("KERNEL_OK")
</pallas_src>

<mosaic_0001>
module attributes {stable_mosaic.version = 11 : i64} {
  func.func @_mlp_kernel(%arg0: i32, %arg1: memref<16x128xbf16, #tpu.memory_space<vmem>>, %arg2: memref<128x128xbf16, #tpu.memory_space<vmem>>, %arg3: memref<1x128xf32, #tpu.memory_space<vmem>>, %arg4: memref<128x128xbf16, #tpu.memory_space<vmem>>, %arg5: memref<1x128xf32, #tpu.memory_space<vmem>>, %arg6: memref<128x128xbf16, #tpu.memory_space<vmem>>, %arg7: memref<1x128xf32, #tpu.memory_space<vmem>>, %arg8: memref<16x128xf32, #tpu.memory_space<vmem>>) attributes {dimension_semantics = [#tpu.dimension_semantics<parallel>], iteration_bounds = array<i64: 1>, scalar_prefetch = 0 : i64, scratch_operands = 0 : i64, tpu.core_type = #tpu.core_type<tc>, window_params = [{transform_indices = @transform_0, window_bounds = array<i64: 16, 128>}, {pipeline_mode = #tpu.pipeline_mode<synchronous>, transform_indices = @transform_1, window_bounds = array<i64: 128, 128>}, {pipeline_mode = #tpu.pipeline_mode<synchronous>, transform_indices = @transform_2, window_bounds = array<i64: 1, 128>}, {pipeline_mode = #tpu.pipeline_mode<synchronous>, transform_indices = @transform_3, window_bounds = array<i64: 128, 128>}, {pipeline_mode = #tpu.pipeline_mode<synchronous>, transform_indices = @transform_4, window_bounds = array<i64: 1, 128>}, {pipeline_mode = #tpu.pipeline_mode<synchronous>, transform_indices = @transform_5, window_bounds = array<i64: 128, 128>}, {pipeline_mode = #tpu.pipeline_mode<synchronous>, transform_indices = @transform_6, window_bounds = array<i64: 1, 128>}, {transform_indices = @transform_7, window_bounds = array<i64: 16, 128>}]} {
    %c0 = arith.constant 0 : index
    %c0_0 = arith.constant 0 : index
    %0 = vector.load %arg1[%c0, %c0_0] : memref<16x128xbf16, #tpu.memory_space<vmem>>, vector<16x128xbf16>
    %c0_1 = arith.constant 0 : index
    %c0_2 = arith.constant 0 : index
    %1 = vector.load %arg2[%c0_1, %c0_2] : memref<128x128xbf16, #tpu.memory_space<vmem>>, vector<128x128xbf16>
    %c0_3 = arith.constant 0 : index
    %c0_4 = arith.constant 0 : index
    %2 = vector.load %arg3[%c0_3, %c0_4] : memref<1x128xf32, #tpu.memory_space<vmem>>, vector<1x128xf32>
    %cst = arith.constant dense<0.000000e+00> : vector<16x128xf32>
    %3 = tpu.matmul %0, %1, %cst {dimension_numbers = #tpu.dot_dimension_numbers<[1], [0], [0], [1], [0, 0, 1, 1], [], []>} : vector<16x128xbf16>, vector<128x128xbf16>, vector<16x128xf32> -> vector<16x128xf32>
    %4 = vector.broadcast %2 : vector<1x128xf32> to vector<16x128xf32>
    %5 = arith.addf %3, %4 : vector<16x128xf32>
    %cst_5 = arith.constant 0.000000e+00 : f32
    %6 = vector.broadcast %cst_5 : f32 to vector<16x128xf32>
    %7 = arith.maximumf %5, %6 : vector<16x128xf32>
    %8 = arith.truncf %7 : vector<16x128xf32> to vector<16x128xbf16>
    %c0_6 = arith.constant 0 : index
    %c0_7 = arith.constant 0 : index
    %9 = vector.load %arg4[%c0_6, %c0_7] : memref<128x128xbf16, #tpu.memory_space<vmem>>, vector<128x128xbf16>
    %c0_8 = arith.constant 0 : index
    %c0_9 = arith.constant 0 : index
    %10 = vector.load %arg5[%c0_8, %c0_9] : memref<1x128xf32, #tpu.memory_space<vmem>>, vector<1x128xf32>
    %cst_10 = arith.constant dense<0.000000e+00> : vector<16x128xf32>
    %11 = tpu.matmul %8, %9, %cst_10 {dimension_numbers = #tpu.dot_dimension_numbers<[1], [0], [0], [1], [0, 0, 1, 1], [], []>} : vector<16x128xbf16>, vector<128x128xbf16>, vector<16x128xf32> -> vector<16x128xf32>
    %12 = vector.broadcast %10 : vector<1x128xf32> to vector<16x128xf32>
    %13 = arith.addf %11, %12 : vector<16x128xf32>
    %cst_11 = arith.constant 0.000000e+00 : f32
    %14 = vector.broadcast %cst_11 : f32 to vector<16x128xf32>
    %15 = arith.maximumf %13, %14 : vector<16x128xf32>
    %16 = arith.truncf %15 : vector<16x128xf32> to vector<16x128xbf16>
    %c0_12 = arith.constant 0 : index
    %c0_13 = arith.constant 0 : index
    %17 = vector.load %arg6[%c0_12, %c0_13] : memref<128x128xbf16, #tpu.memory_space<vmem>>, vector<128x128xbf16>
    %c0_14 = arith.constant 0 : index
    %c0_15 = arith.constant 0 : index
    %18 = vector.load %arg7[%c0_14, %c0_15] : memref<1x128xf32, #tpu.memory_space<vmem>>, vector<1x128xf32>
    %cst_16 = arith.constant dense<0.000000e+00> : vector<16x128xf32>
    %19 = tpu.matmul %16, %17, %cst_16 {dimension_numbers = #tpu.dot_dimension_numbers<[1], [0], [0], [1], [0, 0, 1, 1], [], []>} : vector<16x128xbf16>, vector<128x128xbf16>, vector<16x128xf32> -> vector<16x128xf32>
    %20 = vector.broadcast %18 : vector<1x128xf32> to vector<16x128xf32>
    %21 = arith.addf %19, %20 : vector<16x128xf32>
    %c0_17 = arith.constant 0 : index
    %c0_18 = arith.constant 0 : index
    %22 = vector.load %arg8[%c0_17, %c0_18] : memref<16x128xf32, #tpu.memory_space<vmem>>, vector<16x128xf32>
    tpu.vector_store %arg8[%c0_17, %c0_18], %21 {strides = array<i32>} : memref<16x128xf32, #tpu.memory_space<vmem>>, vector<16x128xf32>,
    return
  }
  func.func @transform_0(%arg0: i32) -> (i32, i32) {
    %c0_i32 = arith.constant 0 : i32
    %c0_i32_0 = arith.constant 0 : i32
    return %arg0, %c0_i32 : i32, i32
  }
  func.func @transform_1(%arg0: i32) -> (i32, i32) {
    %c0_i32 = arith.constant 0 : i32
    %c0_i32_0 = arith.constant 0 : i32
    %c0_i32_1 = arith.constant 0 : i32
    return %c0_i32, %c0_i32_0 : i32, i32
  }
  func.func @transform_2(%arg0: i32) -> (i32, i32) {
    %c0_i32 = arith.constant 0 : i32
    %c0_i32_0 = arith.constant 0 : i32
    %c0_i32_1 = arith.constant 0 : i32
    return %c0_i32, %c0_i32_0 : i32, i32
  }
  func.func @transform_3(%arg0: i32) -> (i32, i32) {
    %c0_i32 = arith.constant 0 : i32
    %c0_i32_0 = arith.constant 0 : i32
    %c0_i32_1 = arith.constant 0 : i32
    return %c0_i32, %c0_i32_0 : i32, i32
  }
  func.func @transform_4(%arg0: i32) -> (i32, i32) {
    %c0_i32 = arith.constant 0 : i32
    %c0_i32_0 = arith.constant 0 : i32
    %c0_i32_1 = arith.constant 0 : i32
    return %c0_i32, %c0_i32_0 : i32, i32
  }
  func.func @transform_5(%arg0: i32) -> (i32, i32) {
    %c0_i32 = arith.constant 0 : i32
    %c0_i32_0 = arith.constant 0 : i32
    %c0_i32_1 = arith.constant 0 : i32
    return %c0_i32, %c0_i32_0 : i32, i32
  }
  func.func @transform_6(%arg0: i32) -> (i32, i32) {
    %c0_i32 = arith.constant 0 : i32
    %c0_i32_0 = arith.constant 0 : i32
    %c0_i32_1 = arith.constant 0 : i32
    return %c0_i32, %c0_i32_0 : i32, i32
  }
  func.func @transform_7(%arg0: i32) -> (i32, i32) {
    %c0_i32 = arith.constant 0 : i32
    %c0_i32_0 = arith.constant 0 : i32
    return %arg0, %c0_i32 : i32, i32
  }
}

</mosaic_0001>

<bundles_post_ra>
// kernel: tpu_custom_call.1
= control target key start
LH: loop header
LB: loop body
LE: loop exit
PB: predicated region body
PF: predicated region fallthrough
CT: control target
= control target key end

     0   :  { %12 = vsyncpa [#allocation3], 0  ;;  %s830_s0 = inlined_call_operand.hbm [shape: bf16[16,128], index: 0, kind: input, shape index: {}]   ;;  %s831_s1 = inlined_call_operand.hbm [shape: bf16[128,128], index: 1, kind: input, shape index: {}]   ;;  %s832_s2 = inlined_call_operand.vmem [shape: f32[1,128], index: 2, kind: input, shape index: {}]   ;;  %s833_s3 = inlined_call_operand.hbm [shape: bf16[128,128], index: 3, kind: input, shape index: {}]   ;;  %s834_s4 = inlined_call_operand.vmem [shape: f32[1,128], index: 4, kind: input, shape index: {}]   ;;  %s835_s5 = inlined_call_operand.hbm [shape: bf16[128,128], index: 5, kind: input, shape index: {}]   ;;  %s836_s6 = inlined_call_operand.vmem [shape: f32[1,128], index: 6, kind: input, shape index: {}]   ;;  %s837_s7 = inlined_call_operand.hbm [shape: f32[16,128], index: 7, kind: output, shape index: {}]  }
   0x1   :  { %13 = vsyncpa [#allocation6], 0 }
   0x2   :  { %14 = vsyncpa [#allocation9], 0 }
   0x3   :  { %15 = vsyncpa [#allocation4], 0  ;;  %s713_s24 = smov [#allocation5]   ;;  %s714_s26 = smov [#allocation2]  }
   0x4   :  { %s33_s25 = sshll.u32 %s713_s24, 4  ;;  %s21_s27 = sshll.u32 %s714_s26, 4  ;;  %s34_s25 = int_to_ptr.vmem [resolvable:$true] %s33_s25  ;;  %s22_s27 = int_to_ptr.vmem [resolvable:$true] %s21_s27 }
   0x5   :  { %s613_s28 = scalar_lea.vmem %s34_s25, 1024  ;;  %p618_p1 = scmp.lt.s32.totalorder %s34_s25, %s34_s25 }
   0x6   :  { %p614_p0 = scmp.ne.s32.totalorder %s34_s25, %s613_s28  ;;  %p619_p2 = scmp.lt.s32.totalorder %s613_s28, %s613_s28 }
   0x8   :  { %p620_p3 = por %p619_p2, %p618_p1 }
   0xa   :  { %p621_p4 = pnand %p620_p3, %p614_p0 }
   0xc   :  { %624 = shalt.err (!%p621_p4)
}
   0xd   :  { %s715_s29 = smov 64   ;;  %s716_s30 = smov 4  }
   0xe   :  { %39 = dma.hbm_to_vmem [thread:$0]  %s831_s1, 1024, %s34_s25, [#allocation6], %s715_s29, %s715_s29, %s716_s30  }
   0xf   :  { %s633_s10 = scalar_lea.vmem %s22_s27, 128  ;;  %p638_p6 = scmp.lt.s32.totalorder %s22_s27, %s22_s27 }
  0x10   :  { %p634_p5 = scmp.ne.s32.totalorder %s22_s27, %s633_s10  ;;  %p639_p7 = scmp.lt.s32.totalorder %s633_s10, %s633_s10 }
  0x12   :  { %p640_p8 = por %p639_p7, %p638_p6 }
  0x14   :  { %p641_p9 = pnand %p640_p8, %p634_p5 }
  0x16   :  { %644 = shalt.err (!%p641_p9)
}
  0x17   :  { %27 = dma.hbm_to_vmem [thread:$0]  %s830_s0, 128, %s22_s27, [#allocation3], %s715_s29, %s715_s29, %s716_s30  }
  0x18   :  { %s717_s13 = smov [#allocation7]   ;;  %s718_s15 = smov [#allocation8]  }
  0x19   :  { %s47_s14 = sshll.u32 %s717_s13, 4  ;;  %s61_s16 = sshll.u32 %s718_s15, 4  ;;  %s48_s14 = int_to_ptr.vmem [resolvable:$true] %s47_s14  ;;  %s62_s16 = int_to_ptr.vmem [resolvable:$true] %s61_s16 }
  0x1a   :  { %s653_s1 = scalar_lea.vmem %s48_s14, 1024  ;;  %p658_p11 = scmp.lt.s32.totalorder %s48_s14, %s48_s14 }
  0x1b   :  { %p654_p10 = scmp.ne.s32.totalorder %s48_s14, %s653_s1  ;;  %p659_p12 = scmp.lt.s32.totalorder %s653_s1, %s653_s1 }
  0x1d   :  { %p660_p13 = por %p659_p12, %p658_p11 }
  0x1f   :  { %p661_p0 = pnand %p660_p13, %p654_p10 }
  0x21   :  { %664 = shalt.err (!%p661_p0)
}
  0x22   :  { %53 = dma.hbm_to_vmem [thread:$0]  %s833_s3, 1024, %s48_s14, [#allocation6], %s715_s29, %s715_s29, %s716_s30  }
  0x23   :  { %s673_s0 = scalar_lea.vmem %s62_s16, 1024  ;;  %p678_p2 = scmp.lt.s32.totalorder %s62_s16, %s62_s16 }
  0x24   :  { %p674_p1 = scmp.ne.s32.totalorder %s62_s16, %s673_s0  ;;  %p679_p3 = scmp.lt.s32.totalorder %s673_s0, %s673_s0 }
  0x26   :  { %p680_p4 = por %p679_p3, %p678_p2 }
  0x28   :  { %p681_p5 = pnand %p680_p4, %p674_p1 }
  0x2a   :  { %684 = shalt.err (!%p681_p5)
}
  0x2b   :  { %67 = dma.hbm_to_vmem [thread:$0]  %s835_s5, 1024, %s62_s16, [#allocation9], %s715_s29, %s715_s29, %s716_s30  }
  0x2c   :  { %705 = dma.done.wait [#allocation3], 128  }
  0x2d   :  { %706 = vsyncadd [#allocation3], 4294967168 }
  0x2e   :  { %707 = dma.done.wait [#allocation6], 2048  }
  0x2f   :  { %708 = vsyncadd [#allocation6], 4294965248 }
  0x30   :  { %709 = dma.done.wait [#allocation9], 1024  }
  0x31   :  { %710 = vsyncadd [#allocation9], 4294966272  ;;  %v719_v0 = vmov 0.0   ;;  %vm720_vm0 = vmmov 0   ;;  %v580_v1 = vld [vmem:[#allocation5 + $0x38] sm:$0xff]   ;;  %v581_v2 = vld [vmem:[#allocation5 + $0x30] sm:$0xff]  }
  0x32   :  { %509 = vmatprep.subr.bf16.mxu0 %v719_v0  ;;  %525 = vmatprep.mubr.msk.bf16.mxu0 %vm720_vm0, %v719_v0  ;;  %v582_v3 = vld [vmem:[#allocation5 + $0x28] sm:$0xff]   ;;  %v589_v4 = vld [vmem:[#allocation7 + $0x38] sm:$0xff]   ;;  %v583_v5 = vld [vmem:[#allocation5 + $0x20] sm:$0xff]   ;;  %s721_s24 = smov [#allocation10]  }
  0x33   :  { %529 = vmatprep.subr.bf16.mxu1 %v719_v0  ;;  %545 = vmatprep.mubr.msk.bf16.mxu1 %vm720_vm0, %v719_v0  ;;  %v590_v6 = vld [vmem:[#allocation7 + $0x30] sm:$0xff]   ;;  %v584_v7 = vld [vmem:[#allocation5 + $0x18] sm:$0xff]   ;;  %v591_v8 = vld [vmem:[#allocation7 + $0x28] sm:$0xff]   ;;  %s440_s25 = sshll.u32 %s721_s24, 4  ;;  %s441_s25 = int_to_ptr.vmem [resolvable:$true] %s440_s25 }
  0x34   :  { %510 = vmatpush3.bf16.msra.mxu0 %v580_v1  ;;  %530 = vmatpush3.bf16.msra.mxu1 %v589_v4  ;;  %v585_v9 = vld [vmem:[#allocation5 + $0x10] sm:$0xff]   ;;  %v592_v10 = vld [vmem:[#allocation7 + $0x20] sm:$0xff]   ;;  %v586_v11 = vld [vmem:[#allocation5 + $0x8] sm:$0xff]   ;;  %p690_p7 = scmp.lt.s32.totalorder %s441_s25, %s441_s25 }
  0x35   :  { %511 = vmatprep.subr.bf16.mxu0 %v719_v0  ;;  %531 = vmatprep.subr.bf16.mxu1 %v719_v0  ;;  %v593_v12 = vld [vmem:[#allocation7 + $0x18] sm:$0xff]   ;;  %v587_v13 = vld [vmem:[#allocation5] sm:$0xff]   ;;  %v594_v15 = vld [vmem:[#allocation7 + $0x10] sm:$0xff]  }
  0x36   :  { %v588_v14 = vld [vmem:[#allocation2] sm:$0xff]   ;;  %v595_v16 = vld [vmem:[#allocation7 + $0x8] sm:$0xff]   ;;  %v596_v17 = vld [vmem:[#allocation7] sm:$0xff]  }
  0x37   :  { %v597_v18 = vld [vmem:[#allocation8 + $0x38] sm:$0xff]   ;;  %v598_v19 = vld [vmem:[#allocation8 + $0x30] sm:$0xff]   ;;  %v599_v20 = vld [vmem:[#allocation8 + $0x28] sm:$0xff]  }
  0x38   :  { %512 = vmatpush3.bf16.msra.mxu0 %v581_v2  ;;  %532 = vmatpush3.bf16.msra.mxu1 %v590_v6  ;;  %v600_v21 = vld [vmem:[#allocation8 + $0x20] sm:$0xff]   ;;  %v601_v22 = vld [vmem:[#allocation8 + $0x18] sm:$0xff]   ;;  %v602_v33 = vld [vmem:[#allocation8 + $0x10] sm:$0xff]  }
  0x39   :  { %513 = vmatprep.subr.bf16.mxu0 %v719_v0  ;;  %533 = vmatprep.subr.bf16.mxu1 %v719_v0  ;;  %v454_v23 = vld [vmem:[%s832_s2] ss:$0 sm:$0xff]  ;;  %v603_v34 = vld [vmem:[#allocation8 + $0x8] sm:$0xff]   ;;  %v604_v35 = vld [vmem:[#allocation8] sm:$0xff]  }
  0x3a   :  { %v464_v36 = vld [vmem:[%s834_s4] ss:$0 sm:$0xff]  ;;  %s685_s4 = scalar_lea.vmem %s441_s25, 256 }
  0x3b   :  { %v473_v46 = vld [vmem:[%s836_s6] ss:$0 sm:$0xff]  ;;  %p686_p6 = scmp.ne.s32.totalorder %s441_s25, %s685_s4  ;;  %p691_p8 = scmp.lt.s32.totalorder %s685_s4, %s685_s4 }
  0x3c   :  { %514 = vmatpush3.bf16.msra.mxu0 %v582_v3  ;;  %534 = vmatpush3.bf16.msra.mxu1 %v591_v8 }
  0x3d   :  { %515 = vmatprep.subr.bf16.mxu0 %v719_v0  ;;  %535 = vmatprep.subr.bf16.mxu1 %v719_v0  ;;  %p692_p9 = por %p691_p8, %p690_p7 }
  0x3f   :  { %p693_p10 = pnand %p692_p9, %p686_p6 }
  0x40   :  { %516 = vmatpush3.bf16.msra.mxu0 %v583_v5  ;;  %536 = vmatpush3.bf16.msra.mxu1 %v592_v10 }
  0x41   :  { %517 = vmatprep.subr.bf16.mxu0 %v719_v0  ;;  %537 = vmatprep.subr.bf16.mxu1 %v719_v0 }
  0x44   :  { %518 = vmatpush3.bf16.msra.mxu0 %v584_v7  ;;  %538 = vmatpush3.bf16.msra.mxu1 %v593_v12 }
  0x45   :  { %519 = vmatprep.subr.bf16.mxu0 %v719_v0  ;;  %539 = vmatprep.subr.bf16.mxu1 %v719_v0 }
  0x48   :  { %520 = vmatpush3.bf16.msra.mxu0 %v585_v9  ;;  %540 = vmatpush3.bf16.msra.mxu1 %v594_v15 }
  0x49   :  { %521 = vmatprep.subr.bf16.mxu0 %v719_v0  ;;  %541 = vmatprep.subr.bf16.mxu1 %v719_v0 }
  0x4c   :  { %522 = vmatpush3.bf16.msra.mxu0 %v586_v11  ;;  %542 = vmatpush3.bf16.msra.mxu1 %v595_v16 }
  0x4d   :  { %523 = vmatprep.subr.bf16.mxu0 %v719_v0  ;;  %543 = vmatprep.subr.bf16.mxu1 %v719_v0 }
  0x50   :  { %524 = vmatpush3.bf16.msra.mxu0 %v587_v13  ;;  %544 = vmatpush3.bf16.msra.mxu1 %v596_v17 }
  0x51   :  { %549 = vmatprep.subr.bf16.mxu0 %v719_v0 }
  0x53   :  { %526 = vmatmul.mubr.bf16.vlgmr.msra.gmra.mxu0 %v588_v14 }
  0x54   :  { %565 = vmatprep.mubr.msk.bf16.mxu0 %vm720_vm0, %v719_v0  ;;  %550 = vmatpush3.bf16.msra.mxu0 %v597_v18 }
  0x55   :  { %551 = vmatprep.subr.bf16.mxu0 %v719_v0 }
  0x58   :  { %552 = vmatpush3.bf16.msra.mxu0 %v598_v19 }
  0x59   :  { %553 = vmatprep.subr.bf16.mxu0 %v719_v0 }
  0x5c   :  { %554 = vmatpush3.bf16.msra.mxu0 %v599_v20 }
  0x5d   :  { %555 = vmatprep.subr.bf16.mxu0 %v719_v0 }
  0x60   :  { %556 = vmatpush3.bf16.msra.mxu0 %v600_v21 }
  0x61   :  { %557 = vmatprep.subr.bf16.mxu0 %v719_v0 }
  0x64   :  { %558 = vmatpush3.bf16.msra.mxu0 %v601_v22 }
  0x65   :  { %559 = vmatprep.subr.bf16.mxu0 %v719_v0 }
  0x68   :  { %560 = vmatpush3.bf16.msra.mxu0 %v602_v33 }
  0x69   :  { %561 = vmatprep.subr.bf16.mxu0 %v719_v0 }
  0x6c   :  { %562 = vmatpush3.bf16.msra.mxu0 %v603_v34 }
  0x6d   :  { %563 = vmatprep.subr.bf16.mxu0 %v719_v0 }
  0x70   :  { %564 = vmatpush3.bf16.msra.mxu0 %v604_v35 }
 0x113   :  { %v196_v24 = vpop.f32.mrf.mxu0 }
 0x114   :  { %v197_v26 = vadd.f32 %v454_v23, %v196_v24 }
 0x115   :  { %v527_v25 = vpop.f32.mrf.mxu0 }
 0x116   :  { %v203_v30 = vmax.f32 %v197_v26, 0.0 }
 0x117   :  { %v199_v27 = vpop.f32.mrf.mxu0 }
 0x118   :  { %v200_v28 = vadd.f32 %v454_v23, %v199_v27 }
 0x119   :  { %v528_v29 = vpop.f32.mrf.mxu0 }
 0x11a   :  { %v204_v31 = vmax.f32 %v200_v28, 0.0 }
 0x11c   :  { %v205_v32 = vpack.c.bf16 %v204_v31, %v203_v30 }
 0x11e   :  { %546 = vmatmul.mubr.bf16.vlgmr.msra.gmra.mxu1 %v205_v32 }
 0x1de   :  { %v311_v37 = vpop.f32.mrf.mxu1 }
 0x1df   :  { %v312_v39 = vadd.f32 %v464_v36, %v311_v37 }
 0x1e0   :  { %v547_v38 = vpop.f32.mrf.mxu1 }
 0x1e1   :  { %v318_v43 = vmax.f32 %v312_v39, 0.0 }
 0x1e2   :  { %v314_v40 = vpop.f32.mrf.mxu1 }
 0x1e3   :  { %v315_v41 = vadd.f32 %v464_v36, %v314_v40 }
 0x1e4   :  { %v548_v42 = vpop.f32.mrf.mxu1 }
 0x1e5   :  { %v319_v44 = vmax.f32 %v315_v41, 0.0 }
 0x1e7   :  { %v320_v45 = vpack.c.bf16 %v319_v44, %v318_v43 }
 0x1e9   :  { %566 = vmatmul.mubr.bf16.vlgmr.msra.gmra.mxu0 %v320_v45 }
 0x2a9   :  { %v426_v47 = vpop.f32.mrf.mxu0 }
 0x2aa   :  { %v427_v48 = vadd.f32 %v473_v46, %v426_v47 }
 0x2ab   :  { %v567_v49 = vpop.f32.mrf.mxu0 }
 0x2ac   :  { %433 = vst [vmem:[#allocation10] sm:$0xff] %v427_v48 }
 0x2ad   :  { %v429_v50 = vpop.f32.mrf.mxu0 }
 0x2ae   :  { %v430_v51 = vadd.f32 %v473_v46, %v429_v50 }
 0x2af   :  { %v568_v52 = vpop.f32.mrf.mxu0 }
 0x2b0   :  { %434 = vst [vmem:[#allocation10 + $0x8] sm:$0xff] %v430_v51 }
 0x2b1   :  { %696 = shalt.err (!%p693_p10)
}
 0x2b2   :  { %s722_s26 = smov 128   ;;  %s723_s6 = smov 8  }
 0x2b3   :  { %446 = dma.vmem_to_hbm [thread:$0]  %s441_s25, 256, %s837_s7, [#allocation4], %s722_s26, %s722_s26, %s723_s6  }
 0x2b4   :  { %711 = dma.done.wait [#allocation4], 256  }
 0x2b5   :  { %712 = vsyncadd [#allocation4], 4294967040 }
 0x2b6   :  { %450 = vsyncpa [#allocation3], 1 }
 0x2b7   :  { %451 = vsyncpa [#allocation6], 1 }
 0x2b8   :  { %452 = vsyncpa [#allocation9], 1 }
 0x2b9   :  { %453 = vsyncpa [#allocation4], 1 }

</bundles_post_ra>
